<compile_context>
chip_gen: v6e
topology: v6e:2x2x1
jax: 0.10.0
libtpu: 0.0.40
codegen_flags: <defaults>
</compile_context>

<pallas_src>
import functools
import math

import jax
import jax.numpy as jnp
from jax.experimental import pallas as pl
from jax.experimental.pallas import tpu as pltpu

EPS = 1e-5
_LANE = 128
_SUBLANE = 8


# ---------------------------------------------------------------------------
# Hardware-derived budgets
# ---------------------------------------------------------------------------
def _hw_params():
    """(tile_budget_bytes, vmem_limit_bytes) per TPU generation.

    These kernels are HBM-streaming; multi-MiB blocks amortize the ~0.35us
    per-grid-step overhead.  v7x has only 64 MiB VMEM (but 3.2 TB/s HBM) so
    its budget is derived separately from v5e/v6e (128 MiB VMEM).  The budget
    is in f32 bytes per streamed block; working set (input tile + f32 cast +
    output tile, x2 double buffers) stays well under vmem_limit_bytes.
    """
    vmem_cap = 128 * 1024 * 1024
    try:
        vmem_cap = int(getattr(pltpu.get_tpu_info(), "vmem_capacity_bytes", vmem_cap))
    except Exception:
        pass
    if vmem_cap <= 64 * 1024 * 1024:                 # v7x-class
        return 5 * 1024 * 1024, 48 * 1024 * 1024
    return 8 * 1024 * 1024, 80 * 1024 * 1024         # v5e / v6e


# ---------------------------------------------------------------------------
# Tiling helpers (robust: no divisibility requirements, cdiv grids)
# ---------------------------------------------------------------------------
def _pick_row_tile(n_rows, bytes_per_row, budget):
    """Second-to-last block dim: multiple of 8 (sublane) within the byte
    budget, capped so there are >= 2 grid steps when possible (megacore);
    returns the full n_rows when it is small (allowed: equals array dim)."""
    if n_rows < 2 * _SUBLANE:
        return n_rows
    max_rows = (budget // max(1, bytes_per_row)) // _SUBLANE * _SUBLANE
    max_rows = max(_SUBLANE, max_rows)
    cap = max(_SUBLANE, (n_rows // 2) // _SUBLANE * _SUBLANE)
    return min(max_rows, cap)


def _pick_leading_tile(n, bytes_per_unit, budget):
    """Leading dim of a 3-D block whose trailing dims are full (no (8,128)
    constraint).  Capped to leave >= 2 grid steps for megacore."""
    max_n = max(1, budget // max(1, bytes_per_unit))
    if n >= 2:
        max_n = min(max_n, max(1, n // 2))
    return max(1, min(n, max_n))


def _lane_pack_factor(n_rows, d):
    """Smallest k with (k*d) % 128 == 0 so streamed loads/stores are
    lane-dense; requires n_rows % k == 0 (otherwise fall back to k=1)."""
    if d % _LANE == 0:
        return 1
    k = _LANE // math.gcd(d, _LANE)
    return k if (n_rows % k == 0) else 1


def _fold_lane_groups(v, groups, feat):
    """Sum `groups` adjacent lane sub-groups of width `feat` (static slices)."""
    if groups == 1:
        return v
    out = v[..., 0:feat]
    for j in range(1, groups):
        out = out + v[..., j * feat:(j + 1) * feat]
    return out


def _tile_lane_groups(v, groups):
    """Replicate a (.., feat) vector `groups` times along lanes."""
    if groups == 1:
        return v
    return jnp.concatenate([v] * groups, axis=-1)


# ---------------------------------------------------------------------------
# Kernels
# ---------------------------------------------------------------------------
def _bn_fused_kernel(n_total, groups, feat, x_ref, g_ref, b_ref, o_ref):
    """Single-pass BN: whole (rows, L) slab resident -> stats + normalize.
    NOTE: var = E[x^2] - mean^2 (clamped); fine in f32 for typical data."""
    x = x_ref[...].astype(jnp.float32)               # (rows, L)
    s = jnp.sum(x, axis=0, keepdims=True)            # (1, L)
    sq = jnp.sum(x * x, axis=0, keepdims=True)
    s = _fold_lane_groups(s, groups, feat)            # (1, D)
    sq = _fold_lane_groups(sq, groups, feat)
    inv_n = 1.0 / n_total
    mean = s * inv_n
    var = jnp.maximum(sq * inv_n - mean * mean, 0.0)  # biased (BatchNorm1d)
    scale = g_ref[...] * jax.lax.rsqrt(var + EPS)
    shift = b_ref[...] - mean * scale
    scale = _tile_lane_groups(scale, groups)          # (1, L)
    shift = _tile_lane_groups(shift, groups)
    o_ref[...] = (x * scale + shift).astype(o_ref.dtype)


def _bn_stats_kernel(n_rows, need_mask, x_ref, sum_ref, sq_ref):
    """BN pass 1: per-lane sum / sum-of-squares into a per-parallel-split
    resident accumulator (grid = (P, inner); inner is the reduction axis)."""
    p = pl.program_id(0)
    i = pl.program_id(1)

    @pl.when(i == 0)
    def _init():
        sum_ref[...] = jnp.zeros_like(sum_ref)
        sq_ref[...] = jnp.zeros_like(sq_ref)

    x = x_ref[...].astype(jnp.float32)               # (row_tile, L)
    if need_mask:
        row_tile = x.shape[0]
        start = (p * pl.num_programs(1) + i) * row_tile
        ridx = start + jax.lax.broadcasted_iota(jnp.int32, x.shape, 0)
        x = jnp.where(ridx < n_rows, x, 0.0)
    lanes = x.shape[1]
    sum_ref[...] += jnp.sum(x, axis=0, keepdims=True).reshape(1, 1, lanes)
    sq_ref[...] += jnp.sum(x * x, axis=0, keepdims=True).reshape(1, 1, lanes)


def _bn_apply_kernel(n_total, groups, feat, x_ref, sum_ref, sq_ref,
                     g_ref, b_ref, o_ref):
    """BN pass 2: finalize folded in-kernel (fold P partials + lane groups ->
    scale/shift; tiny O(L) VALU work hidden under DMA), then streamed FMA."""
    s = jnp.sum(sum_ref[...], axis=0)                 # (P,1,L) -> (1, L)
    sq = jnp.sum(sq_ref[...], axis=0)
    s = _fold_lane_groups(s, groups, feat)            # (1, D)
    sq = _fold_lane_groups(sq, groups, feat)
    inv_n = 1.0 / n_total
    mean = s * inv_n
    var = jnp.maximum(sq * inv_n - mean * mean, 0.0)
    scale = g_ref[...] * jax.lax.rsqrt(var + EPS)
    shift = b_ref[...] - mean * scale
    scale = _tile_lane_groups(scale, groups)          # (1, L)
    shift = _tile_lane_groups(shift, groups)
    x = x_ref[...].astype(jnp.float32)
    o_ref[...] = (x * scale + shift).astype(o_ref.dtype)


def _instance_fused_kernel(s_len, groups, feat, x_ref, g_ref, b_ref, o_ref):
    """InstanceNorm1d: x block (bt, S/g, g*D) lane-dense; stats over S per
    (b, d) via one traversal sum/sumsq + fold of the g lane sub-groups."""
    x = x_ref[...].astype(jnp.float32)               # (bt, SC, L)
    s1 = jnp.sum(x, axis=1)                          # (bt, L)
    s2 = jnp.sum(x * x, axis=1)
    s1 = _fold_lane_groups(s1, groups, feat)          # (bt, D)
    s2 = _fold_lane_groups(s2, groups, feat)
    inv_n = 1.0 / s_len
    mean = s1 * inv_n
    var = jnp.maximum(s2 * inv_n - mean * mean, 0.0)  # biased (InstanceNorm1d)
    scale = g_ref[...] * jax.lax.rsqrt(var + EPS)     # (bt, D)
    shift = b_ref[...] - mean * scale
    scale = _tile_lane_groups(scale, groups)          # (bt, L)
    shift = _tile_lane_groups(shift, groups)
    o_ref[...] = (x * scale[:, None, :] + shift[:, None, :]).astype(o_ref.dtype)


def _in_stats_kernel(n_s, need_mask, x_ref, sum_ref, sq_ref):
    """Streamed instance-norm pass 1: per-(b, lane) sum / sumsq over S chunks."""
    i = pl.program_id(1)

    @pl.when(i == 0)
    def _init():
        sum_ref[...] = jnp.zeros_like(sum_ref)
        sq_ref[...] = jnp.zeros_like(sq_ref)

    x = x_ref[...].astype(jnp.float32)               # (1, st, L)
    if need_mask:
        st = x.shape[1]
        sidx = i * st + jax.lax.broadcasted_iota(jnp.int32, x.shape, 1)
        x = jnp.where(sidx < n_s, x, 0.0)
    sum_ref[...] += jnp.sum(x, axis=1, keepdims=True)
    sq_ref[...] += jnp.sum(x * x, axis=1, keepdims=True)


def _scale_shift_kernel(x_ref, scale_ref, shift_ref, o_ref):
    """Streamed o = x * scale + shift (per-sample scale/shift broadcast)."""
    x = x_ref[...].astype(jnp.float32)
    o_ref[...] = (x * scale_ref[...] + shift_ref[...]).astype(o_ref.dtype)


def _layernorm_kernel(x_ref, o_ref):
    """Per-sample norm over flattened (S*D); torch.var default UNBIASED (N-1).
    Single traversal: sum & sumsq together, multiply by precomputed 1/n."""
    x = x_ref[...].astype(jnp.float32)               # (bt, L)
    n = x.shape[-1]
    inv_n = 1.0 / n
    inv_nm1 = (1.0 / (n - 1)) if n > 1 else float("nan")   # matches torch n==1
    s = jnp.sum(x, axis=-1, keepdims=True)
    sq = jnp.sum(x * x, axis=-1, keepdims=True)
    mean = s * inv_n
    var = jnp.maximum((sq - s * mean) * inv_nm1, 0.0)
    o_ref[...] = ((x - mean) * jax.lax.rsqrt(var + EPS)).astype(o_ref.dtype)


# ---------------------------------------------------------------------------
# Wrapper
# ---------------------------------------------------------------------------
class Normalization:
    """JAX/Pallas port of the PyTorch `Normalization` module (forward only)."""

    def __init__(self, embed_dim, normalization="batch"):
        self.embed_dim = embed_dim
        self.normalization = normalization
        self._tile_budget, self._vmem_limit = _hw_params()
        if normalization != "layer":
            # PyTorch init is gamma=1, beta=0 -- perturbed so the affine path
            # is actually exercised by the checks below.
            self.gamma = 1.0 + 0.01 * jnp.arange(embed_dim, dtype=jnp.float32)
            self.beta = 0.01 * jnp.arange(embed_dim, dtype=jnp.float32)
        else:
            self.gamma = None
            self.beta = None

    def _params(self, semantics):
        return pltpu.CompilerParams(
            dimension_semantics=semantics,
            vmem_limit_bytes=self._vmem_limit)

    # -- BatchNorm1d over (B*S, D), training statistics ----------------------
    def _batch(self, x):
        B, S, D = x.shape
        N = B * S
        itemsize = x.dtype.itemsize
        k = _lane_pack_factor(N, D)                   # lane-dense repack
        L = k * D
        rows = N // k
        xf = x.reshape(rows, L)
        g2 = self.gamma.reshape(1, D)
        b2 = self.beta.reshape(1, D)

        # Fast path: whole slab resident -> one HBM read + one write.
        if rows * L * 4 <= self._tile_budget:
            out = pl.pallas_call(
                functools.partial(_bn_fused_kernel, N, k, D),
                grid=(1,),
                in_specs=[pl.BlockSpec((rows, L), lambda i: (0, 0)),
                          pl.BlockSpec((1, D), lambda i: (0, 0)),
                          pl.BlockSpec((1, D), lambda i: (0, 0))],
                out_specs=pl.BlockSpec((rows, L), lambda i: (0, 0)),
                out_shape=jax.ShapeDtypeStruct((rows, L), x.dtype),
                compiler_params=self._params(("arbitrary",)),
                cost_estimate=pl.CostEstimate(
                    flops=5 * rows * L, transcendentals=D,
                    bytes_accessed=2 * rows * L * itemsize),
            )(xf, g2, b2)
            return out.reshape(B, S, D)

        # Streamed two-pass path.
        row_tile = _pick_row_tile(rows, L * 4, self._tile_budget)
        n_blocks = pl.cdiv(rows, row_tile)
        P = 2 if n_blocks >= 2 else 1                 # megacore split of the reduction
        inner = pl.cdiv(n_blocks, P)
        last_blk = n_blocks - 1
        need_mask = (rows % row_tile != 0) or (P * inner != n_blocks)

        # Pass 1: streamed sum / sum-of-squares (one HBM read of x), two
        # partial accumulators (one per parallel split), ragged tail masked.
        lane_sum, lane_sq = pl.pallas_call(
            functools.partial(_bn_stats_kernel, rows, need_mask),
            grid=(P, inner),
            in_specs=[pl.BlockSpec(
                (row_tile, L),
                lambda p, i: (jnp.minimum(p * inner + i, last_blk), 0))],
            out_specs=(pl.BlockSpec((1, 1, L), lambda p, i: (p, 0, 0)),
                       pl.BlockSpec((1, 1, L), lambda p, i: (p, 0, 0))),
            out_shape=(jax.ShapeDtypeStruct((P, 1, L), jnp.float32),
                       jax.ShapeDtypeStruct((P, 1, L), jnp.float32)),
            compiler_params=self._params(("parallel", "arbitrary")),
            cost_estimate=pl.CostEstimate(
                flops=3 * rows * L, transcendentals=0,
                bytes_accessed=rows * L * itemsize + 2 * P * L * 4),
        )(xf)

        # Pass 2: streamed FMA; finalize (fold partials/lane groups + affine)
        # is done inside the kernel -> no XLA glue between the two passes.
        out = pl.pallas_call(
            functools.partial(_bn_apply_kernel, N, k, D),
            grid=(n_blocks,),
            in_specs=[pl.BlockSpec((row_tile, L), lambda i: (i, 0)),
                      pl.BlockSpec((P, 1, L), lambda i: (0, 0, 0)),
                      pl.BlockSpec((P, 1, L), lambda i: (0, 0, 0)),
                      pl.BlockSpec((1, D), lambda i: (0, 0)),
                      pl.BlockSpec((1, D), lambda i: (0, 0))],
            out_specs=pl.BlockSpec((row_tile, L), lambda i: (i, 0)),
            out_shape=jax.ShapeDtypeStruct((rows, L), x.dtype),
            compiler_params=self._params(("parallel",)),
            cost_estimate=pl.CostEstimate(
                flops=2 * rows * L, transcendentals=D,
                bytes_accessed=2 * rows * L * itemsize + 2 * P * L * 4),
        )(xf, lane_sum, lane_sq, g2, b2)
        return out.reshape(B, S, D)

    # -- InstanceNorm1d: normalize over S per (b, d) --------------------------
    def _instance(self, x):
        B, S, D = x.shape
        g = _lane_pack_factor(S, D)                   # pack g rows of S into lanes
        SC = S // g
        L = g * D
        xp = x.reshape(B, SC, L)                      # pure reshape, contiguous
        slab_bytes = SC * L * 4                       # one sample, f32
        if slab_bytes > self._tile_budget:
            return self._instance_streamed(xp, B, S, D, g)

        g2 = self.gamma.reshape(1, D)
        b2 = self.beta.reshape(1, D)
        bt = _pick_leading_tile(B, slab_bytes, self._tile_budget)
        nb = pl.cdiv(B, bt)
        out = pl.pallas_call(
            functools.partial(_instance_fused_kernel, S, g, D),
            grid=(nb,),
            in_specs=[pl.BlockSpec((bt, SC, L), lambda i: (i, 0, 0)),
                      pl.BlockSpec((1, D), lambda i: (0, 0)),
                      pl.BlockSpec((1, D), lambda i: (0, 0))],
            out_specs=pl.BlockSpec((bt, SC, L), lambda i: (i, 0, 0)),
            out_shape=jax.ShapeDtypeStruct((B, SC, L), x.dtype),
            compiler_params=self._params(("parallel",)),
            cost_estimate=pl.CostEstimate(
                flops=6 * B * SC * L, transcendentals=B * D,
                bytes_accessed=2 * B * SC * L * x.dtype.itemsize + 2 * D * 4),
        )(xp, g2, b2)
        return out.reshape(B, S, D)

    def _instance_streamed(self, xp, B, S, D, g):
        """Two-pass instance norm streaming over S chunks (large S)."""
        SC = S // g
        L = g * D
        itemsize = xp.dtype.itemsize
        st = _pick_row_tile(SC, L * 4, self._tile_budget)
        n_sc = pl.cdiv(SC, st)
        need_mask = (SC % st) != 0

        s1, s2 = pl.pallas_call(
            functools.partial(_in_stats_kernel, SC, need_mask),
            grid=(B, n_sc),
            in_specs=[pl.BlockSpec((1, st, L), lambda b, i: (b, i, 0))],
            out_specs=(pl.BlockSpec((1, 1, L), lambda b, i: (b, 0, 0)),
                       pl.BlockSpec((1, 1, L), lambda b, i: (b, 0, 0))),
            out_shape=(jax.ShapeDtypeStruct((B, 1, L), jnp.float32),
                       jax.ShapeDtypeStruct((B, 1, L), jnp.float32)),
            compiler_params=self._params(("parallel", "arbitrary")),
            cost_estimate=pl.CostEstimate(
                flops=3 * B * SC * L, transcendentals=0,
                bytes_accessed=B * SC * L * itemsize + 2 * B * L * 4),
        )(xp)

        # Tiny O(B*D) finalize in plain JAX: fold the g lane sub-groups.
        s1 = s1.reshape(B, g, D).sum(axis=1)
        s2 = s2.reshape(B, g, D).sum(axis=1)
        mean = s1 / S
        var = jnp.maximum(s2 / S - mean * mean, 0.0)  # biased (InstanceNorm1d)
        scale = self.gamma * jax.lax.rsqrt(var + EPS)  # (B, D)
        shift = self.beta - mean * scale
        scale_t = jnp.tile(scale, (1, g)).reshape(B, 1, L)
        shift_t = jnp.tile(shift, (1, g)).reshape(B, 1, L)

        out = pl.pallas_call(
            _scale_shift_kernel,
            grid=(B, n_sc),
            in_specs=[pl.BlockSpec((1, st, L), lambda b, i: (b, i, 0)),
                      pl.BlockSpec((1, 1, L), lambda b, i: (b, 0, 0)),
                      pl.BlockSpec((1, 1, L), lambda b, i: (b, 0, 0))],
            out_specs=pl.BlockSpec((1, st, L), lambda b, i: (b, i, 0)),
            out_shape=jax.ShapeDtypeStruct((B, SC, L), xp.dtype),
            compiler_params=self._params(("parallel", "arbitrary")),
            cost_estimate=pl.CostEstimate(
                flops=2 * B * SC * L, transcendentals=0,
                bytes_accessed=2 * B * SC * L * itemsize),
        )(xp, scale_t, shift_t)
        return out.reshape(B, S, D)

    # -- Layer norm: per-sample over (S, D), unbiased var, no affine ----------
    def _layer(self, x):
        B, S, D = x.shape
        L = S * D
        xf = x.reshape(B, L)                          # lane-dense per-sample view
        # TODO(synk): stream over the (S*D) axis when a single sample exceeds
        # the tile budget (extremely large S*D).
        bt = _pick_row_tile(B, L * 4, self._tile_budget)
        nb = pl.cdiv(B, bt)
        out = pl.pallas_call(
            _layernorm_kernel,
            grid=(nb,),
            in_specs=[pl.BlockSpec((bt, L), lambda i: (i, 0))],
            out_specs=pl.BlockSpec((bt, L), lambda i: (i, 0)),
            out_shape=jax.ShapeDtypeStruct((B, L), x.dtype),
            compiler_params=self._params(("parallel",)),
            cost_estimate=pl.CostEstimate(
                flops=7 * B * L, transcendentals=B,
                bytes_accessed=2 * B * L * x.dtype.itemsize),
        )(xf)
        return out.reshape(B, S, D)

    def __call__(self, x):
        B, S, D = x.shape
        assert D == self.embed_dim
        if self.normalization == "batch":
            return self._batch(x)
        if self.normalization == "instance":
            return self._instance(x)
        if self.normalization == "layer":
            return self._layer(x)
        # Unknown normalizer type -> identity (matches the module's else path)
        return x


# ---------------------------------------------------------------------------
# Reference (pure JAX) for sanity checking
# ---------------------------------------------------------------------------
def _ref_batch(x, gamma, beta):
    B, S, D = x.shape
    xf = x.reshape(B * S, D).astype(jnp.float32)
    mean = xf.mean(0)
    var = ((xf - mean) ** 2).mean(0)
    xhat = (xf - mean) / jnp.sqrt(var + EPS)
    return (xhat * gamma + beta).reshape(B, S, D)


def _ref_instance(x, gamma, beta):
    xf = x.astype(jnp.float32)
    mean = xf.mean(1, keepdims=True)
    var = ((xf - mean) ** 2).mean(1, keepdims=True)
    xhat = (xf - mean) / jnp.sqrt(var + EPS)
    return xhat * gamma.reshape(1, 1, -1) + beta.reshape(1, 1, -1)


def _ref_layer(x):
    xf = x.astype(jnp.float32)
    mean = xf.mean((1, 2), keepdims=True)
    n = xf.shape[1] * xf.shape[2]
    var = ((xf - mean) ** 2).sum((1, 2), keepdims=True) / (n - 1)
    return (xf - mean) / jnp.sqrt(var + EPS)


if __name__ == "__main__":
    key = jax.random.PRNGKey(0)

    # --- small shapes: fused / fast paths ---
    B, S, D = 2, 8, 32
    x = jax.random.normal(key, (B, S, D), dtype=jnp.float32)

    bn = Normalization(D, "batch")
    out_b = jax.block_until_ready(bn(x))
    assert out_b.shape == (B, S, D)
    assert jnp.allclose(out_b, _ref_batch(x, bn.gamma, bn.beta), atol=2e-4), "batch mismatch"

    inorm = Normalization(D, "instance")
    out_i = jax.block_until_ready(inorm(x))
    assert jnp.allclose(out_i, _ref_instance(x, inorm.gamma, inorm.beta), atol=2e-4), \
        "instance mismatch"

    lnorm = Normalization(D, "layer")
    out_l = jax.block_until_ready(lnorm(x))
    assert jnp.allclose(out_l, _ref_layer(x), atol=2e-4), "layer mismatch"

    # --- larger shapes with a tiny forced tile budget: exercise the streamed
    #     two-pass paths, ragged-block masking and the megacore stats split ---
    xb = jax.random.normal(jax.random.PRNGKey(1), (4, 72, 32), dtype=jnp.float32)
    bn2 = Normalization(32, "batch")
    bn2._tile_budget = 8 * 1024
    ob = jax.block_until_ready(bn2(xb))
    assert jnp.allclose(ob, _ref_batch(xb, bn2.gamma, bn2.beta), atol=2e-4), \
        "batch(streamed) mismatch"

    xi = jax.random.normal(jax.random.PRNGKey(2), (3, 80, 32), dtype=jnp.float32)
    in2 = Normalization(32, "instance")
    in2._tile_budget = 4 * 1024
    oi = jax.block_until_ready(in2(xi))
    assert jnp.allclose(oi, _ref_instance(xi, in2.gamma, in2.beta), atol=2e-4), \
        "instance(streamed) mismatch"

    xl = jax.random.normal(jax.random.PRNGKey(3), (20, 16, 32), dtype=jnp.float32)
    ln2 = Normalization(32, "layer")
    ln2._tile_budget = 4 * 1024
    ol = jax.block_until_ready(ln2(xl))
    assert jnp.allclose(ol, _ref_layer(xl), atol=2e-4), "layer(tiled) mismatch"

    print("KERNEL_OK")
</pallas_src>

<mosaic_0001>
module attributes {stable_mosaic.version = 11 : i64} {
  func.func @_bn_fused_kernel(%arg0: i32, %arg1: memref<4x128xf32, #tpu.memory_space<vmem>>, %arg2: memref<1x32xf32, #tpu.memory_space<vmem>>, %arg3: memref<1x32xf32, #tpu.memory_space<vmem>>, %arg4: memref<4x128xf32, #tpu.memory_space<vmem>>) attributes {dimension_semantics = [#tpu.dimension_semantics<arbitrary>], iteration_bounds = array<i64: 1>, scalar_prefetch = 0 : i64, scratch_operands = 0 : i64, tpu.core_type = #tpu.core_type<tc>, window_params = [{pipeline_mode = #tpu.pipeline_mode<synchronous>, transform_indices = @transform_0, window_bounds = array<i64: 4, 128>}, {pipeline_mode = #tpu.pipeline_mode<synchronous>, transform_indices = @transform_1, window_bounds = array<i64: 1, 32>}, {pipeline_mode = #tpu.pipeline_mode<synchronous>, transform_indices = @transform_2, window_bounds = array<i64: 1, 32>}, {pipeline_mode = #tpu.pipeline_mode<synchronous>, transform_indices = @transform_3, window_bounds = array<i64: 4, 128>}]} {
    %c0 = arith.constant 0 : index
    %c0_0 = arith.constant 0 : index
    %0 = vector.load %arg1[%c0, %c0_0] : memref<4x128xf32, #tpu.memory_space<vmem>>, vector<4x128xf32>
    %cst = arith.constant dense<0.000000e+00> : vector<128xf32>
    %1 = vector.multi_reduction <add>, %0, %cst [0] : vector<4x128xf32> to vector<128xf32>
    %2 = vector.shape_cast %1 : vector<128xf32> to vector<1x128xf32>
    %3 = arith.mulf %0, %0 : vector<4x128xf32>
    %cst_1 = arith.constant dense<0.000000e+00> : vector<128xf32>
    %4 = vector.multi_reduction <add>, %3, %cst_1 [0] : vector<4x128xf32> to vector<128xf32>
    %5 = vector.shape_cast %4 : vector<128xf32> to vector<1x128xf32>
    %6 = vector.extract_strided_slice %2 {offsets = [0, 0], sizes = [1, 32], strides = [1, 1]} : vector<1x128xf32> to vector<1x32xf32>
    %7 = vector.extract_strided_slice %2 {offsets = [0, 32], sizes = [1, 32], strides = [1, 1]} : vector<1x128xf32> to vector<1x32xf32>
    %8 = arith.addf %6, %7 : vector<1x32xf32>
    %9 = vector.extract_strided_slice %2 {offsets = [0, 64], sizes = [1, 32], strides = [1, 1]} : vector<1x128xf32> to vector<1x32xf32>
    %10 = arith.addf %8, %9 : vector<1x32xf32>
    %11 = vector.extract_strided_slice %2 {offsets = [0, 96], sizes = [1, 32], strides = [1, 1]} : vector<1x128xf32> to vector<1x32xf32>
    %12 = arith.addf %10, %11 : vector<1x32xf32>
    %13 = vector.extract_strided_slice %5 {offsets = [0, 0], sizes = [1, 32], strides = [1, 1]} : vector<1x128xf32> to vector<1x32xf32>
    %14 = vector.extract_strided_slice %5 {offsets = [0, 32], sizes = [1, 32], strides = [1, 1]} : vector<1x128xf32> to vector<1x32xf32>
    %15 = arith.addf %13, %14 : vector<1x32xf32>
    %16 = vector.extract_strided_slice %5 {offsets = [0, 64], sizes = [1, 32], strides = [1, 1]} : vector<1x128xf32> to vector<1x32xf32>
    %17 = arith.addf %15, %16 : vector<1x32xf32>
    %18 = vector.extract_strided_slice %5 {offsets = [0, 96], sizes = [1, 32], strides = [1, 1]} : vector<1x128xf32> to vector<1x32xf32>
    %19 = arith.addf %17, %18 : vector<1x32xf32>
    %cst_2 = arith.constant 6.250000e-02 : f32
    %20 = vector.broadcast %cst_2 : f32 to vector<1x32xf32>
    %21 = arith.mulf %12, %20 : vector<1x32xf32>
    %cst_3 = arith.constant 6.250000e-02 : f32
    %22 = vector.broadcast %cst_3 : f32 to vector<1x32xf32>
    %23 = arith.mulf %19, %22 : vector<1x32xf32>
    %24 = arith.mulf %21, %21 : vector<1x32xf32>
    %25 = arith.subf %23, %24 : vector<1x32xf32>
    %cst_4 = arith.constant 0.000000e+00 : f32
    %26 = vector.broadcast %cst_4 : f32 to vector<1x32xf32>
    %27 = arith.maximumf %25, %26 : vector<1x32xf32>
    %c0_5 = arith.constant 0 : index
    %c0_6 = arith.constant 0 : index
    %28 = vector.load %arg2[%c0_5, %c0_6] : memref<1x32xf32, #tpu.memory_space<vmem>>, vector<1x32xf32>
    %cst_7 = arith.constant 9.99999974E-6 : f32
    %29 = vector.broadcast %cst_7 : f32 to vector<1x32xf32>
    %30 = arith.addf %27, %29 : vector<1x32xf32>
    %31 = math.rsqrt %30 : vector<1x32xf32>
    %32 = arith.mulf %28, %31 : vector<1x32xf32>
    %c0_8 = arith.constant 0 : index
    %c0_9 = arith.constant 0 : index
    %33 = vector.load %arg3[%c0_8, %c0_9] : memref<1x32xf32, #tpu.memory_space<vmem>>, vector<1x32xf32>
    %34 = arith.mulf %21, %32 : vector<1x32xf32>
    %35 = arith.subf %33, %34 : vector<1x32xf32>
    %36 = tpu.concatenate %32, %32, %32, %32 in 1 : vector<1x32xf32>, vector<1x32xf32>, vector<1x32xf32>, vector<1x32xf32> -> vector<1x128xf32>
    %37 = tpu.concatenate %35, %35, %35, %35 in 1 : vector<1x32xf32>, vector<1x32xf32>, vector<1x32xf32>, vector<1x32xf32> -> vector<1x128xf32>
    %38 = vector.broadcast %36 : vector<1x128xf32> to vector<4x128xf32>
    %39 = arith.mulf %0, %38 : vector<4x128xf32>
    %40 = vector.broadcast %37 : vector<1x128xf32> to vector<4x128xf32>
    %41 = arith.addf %39, %40 : vector<4x128xf32>
    %c0_10 = arith.constant 0 : index
    %c0_11 = arith.constant 0 : index
    %42 = vector.load %arg4[%c0_10, %c0_11] : memref<4x128xf32, #tpu.memory_space<vmem>>, vector<4x128xf32>
    tpu.vector_store %arg4[%c0_10, %c0_11], %41 {strides = array<i32>} : memref<4x128xf32, #tpu.memory_space<vmem>>, vector<4x128xf32>,
    return
  }
  func.func @transform_0(%arg0: i32) -> (i32, i32) {
    %c0_i32 = arith.constant 0 : i32
    %c0_i32_0 = arith.constant 0 : i32
    %c0_i32_1 = arith.constant 0 : i32
    return %c0_i32, %c0_i32_0 : i32, i32
  }
  func.func @transform_1(%arg0: i32) -> (i32, i32) {
    %c0_i32 = arith.constant 0 : i32
    %c0_i32_0 = arith.constant 0 : i32
    %c0_i32_1 = arith.constant 0 : i32
    return %c0_i32, %c0_i32_0 : i32, i32
  }
  func.func @transform_2(%arg0: i32) -> (i32, i32) {
    %c0_i32 = arith.constant 0 : i32
    %c0_i32_0 = arith.constant 0 : i32
    %c0_i32_1 = arith.constant 0 : i32
    return %c0_i32, %c0_i32_0 : i32, i32
  }
  func.func @transform_3(%arg0: i32) -> (i32, i32) {
    %c0_i32 = arith.constant 0 : i32
    %c0_i32_0 = arith.constant 0 : i32
    %c0_i32_1 = arith.constant 0 : i32
    return %c0_i32, %c0_i32_0 : i32, i32
  }
}

</mosaic_0001>

<bundles_post_ra>
// kernel: tpu_custom_call.1
= control target key start
LH: loop header
LB: loop body
LE: loop exit
PB: predicated region body
PF: predicated region fallthrough
CT: control target
= control target key end

     0   :  { %8 = vsyncpa [#allocation3], 0  ;;  %s251_s0 = inlined_call_operand.hbm [shape: f32[4,128], index: 0, kind: input, shape index: {}]   ;;  %s252_s1 = inlined_call_operand.vmem [shape: f32[1,32], index: 1, kind: input, shape index: {}]   ;;  %s253_s2 = inlined_call_operand.vmem [shape: f32[1,32], index: 2, kind: input, shape index: {}]   ;;  %s254_s3 = inlined_call_operand.hbm [shape: f32[4,128], index: 3, kind: output, shape index: {}]  }
   0x1   :  { %9 = vsyncpa [#allocation4], 0  ;;  %s196_s12 = smov [#allocation2]  }
   0x2   :  { %s16_s13 = sshll.u32 %s196_s12, 4  ;;  %s17_s13 = int_to_ptr.vmem [resolvable:$true] %s16_s13 }
   0x3   :  { %s160_s14 = scalar_lea.vmem %s17_s13, 64  ;;  %p165_p1 = scmp.lt.s32.totalorder %s17_s13, %s17_s13 }
   0x4   :  { %p161_p0 = scmp.ne.s32.totalorder %s17_s13, %s160_s14  ;;  %p166_p2 = scmp.lt.s32.totalorder %s160_s14, %s160_s14 }
   0x6   :  { %p167_p3 = por %p166_p2, %p165_p1 }
   0x8   :  { %p168_p4 = pnand %p167_p3, %p161_p0 }
   0xa   :  { %171 = shalt.err (!%p168_p4)
}
   0xb   :  { %19 = dma.hbm_to_vmem [thread:$0]  %s251_s0, 64, %s17_s13, [#allocation3]  }
   0xc   :  { %192 = dma.done.wait [#allocation3], 64  }
   0xd   :  { %193 = vsyncadd [#allocation3], 4294967232  ;;  %vm28_vm0 = vcmask 1043456   ;;  %v224_v0 = vld [vmem:[#allocation2] sm:$0xf]  ;;  %s197_s0 = smov 96   ;;  %v83_v34 = vlaneseq }
   0xe   :  { %v29_v1 = vsel %vm28_vm0, %v224_v0, 0.0  ;;  %v36_v2 = vmul.f32 %v224_v0, %v224_v0  ;;  %s198_s17 = smov 32   ;;  %s199_s18 = smov 64   ;;  %v75_v36 = vld [vmem:[%s252_s1] sm:$0x1]  ;;  %vm96_vm1 = vcmask 261120  }
   0xf   :  { %v30_v3 = vrot.slane %v29_v1, 4  ;;  %v84_v35 = vshrl.u32 %v83_v34, 7  ;;  %v79_v40 = vld [vmem:[%s253_s2] sm:$0x1]  ;;  %vm98_vm2 = vcmask 523264   ;;  %vm100_vm3 = vcmask 785408  }
  0x10   :  { %v37_v4 = vsel %vm28_vm0, %v36_v2, 0.0  ;;  %s200_s1 = smov [#allocation5]  }
  0x11   :  { %v31_v5 = vadd.f32 %v30_v3, %v29_v1  ;;  %v38_v6 = vrot.slane %v37_v4, 4  ;;  %v85_v37 = vsub.s32 0, %v84_v35  ;;  %s136_s2 = sshll.u32 %s200_s1, 4  ;;  %s137_s2 = int_to_ptr.vmem [resolvable:$true] %s136_s2 }
  0x12   :  { %s172_s23 = scalar_lea.vmem %s137_s2, 64  ;;  %p177_p6 = scmp.lt.s32.totalorder %s137_s2, %s137_s2 }
  0x13   :  { %v32_v7 = vrot.slane %v31_v5, 2  ;;  %v39_v8 = vadd.f32 %v38_v6, %v37_v4  ;;  %p173_p5 = scmp.ne.s32.totalorder %s137_s2, %s172_s23  ;;  %p178_p7 = scmp.lt.s32.totalorder %s172_s23, %s172_s23 }
  0x15   :  { %v33_v9 = vadd.f32 %v32_v7, %v31_v5  ;;  %v40_v10 = vrot.slane %v39_v8, 2  ;;  %p179_p8 = por %p178_p7, %p177_p6 }
  0x17   :  { %v34_v11 = vrot.slane %v33_v9, 1  ;;  %v41_v12 = vadd.f32 %v40_v10, %v39_v8  ;;  %p180_p9 = pnand %p179_p8, %p173_p5 }
  0x19   :  { %v35_v13 = vadd.f32 %v34_v11, %v33_v9  ;;  %v42_v14 = vrot.slane %v41_v12, 1 }
  0x1b   :  { %45 = vrot.lane.b32.xlu0 %v35_v13, %s197_s0  ;;  %53 = vrot.lane.b32.xlu1 %v35_v13, %s198_s17  ;;  %v43_v15 = vadd.f32 %v42_v14, %v41_v12 }
  0x1f   :  { %49 = vrot.lane.b32.xlu0 %v35_v13, %s199_s18  ;;  %58 = vrot.lane.b32.xlu1 %v43_v15, %s197_s0 }
  0x23   :  { %62 = vrot.lane.b32.xlu0 %v43_v15, %s199_s18  ;;  %66 = vrot.lane.b32.xlu1 %v43_v15, %s198_s17 }
  0x8d   :  { %v46_v16 = vpop.permute.xlu0 %45  ;;  %v54_v17 = vpop.permute.xlu1 %53 }
  0x8e   :  { %v48_v18 = vadd.f32 %v46_v16, %v35_v13 }
  0x91   :  { %v50_v19 = vpop.permute.xlu0 %49  ;;  %v59_v20 = vpop.permute.xlu1 %58 }
  0x92   :  { %v52_v21 = vadd.f32 %v50_v19, %v48_v18  ;;  %v61_v22 = vadd.f32 %v59_v20, %v43_v15 }
  0x94   :  { %v56_v23 = vadd.f32 %v54_v17, %v52_v21 }
  0x95   :  { %v63_v24 = vpop.permute.xlu0 %62  ;;  %v67_v25 = vpop.permute.xlu1 %66 }
  0x96   :  { %v70_v26 = vmul.f32 0.0625, %v56_v23  ;;  %v65_v27 = vadd.f32 %v63_v24, %v61_v22 }
  0x98   :  { %v69_v28 = vadd.f32 %v67_v25, %v65_v27  ;;  %v72_v30 = vmul.f32 %v70_v26, %v70_v26 }
  0x9a   :  { %v71_v29 = vmul.f32 0.0625, %v69_v28 }
  0x9c   :  { %v73_v31 = vsub.f32 %v71_v29, %v72_v30 }
  0x9e   :  { %v74_v32 = vmax.f32 %v73_v31, 0.0 }
  0xa0   :  { %v76_v33 = vadd.f32 1e-05, %v74_v32 }
  0xa2   :  { %150 = vrsqrt.f32 %v76_v33 }
  0xaf   :  { %v151_v38 = vpop.eup %150 }
  0xb0   :  { %v78_v39 = vmul.f32 %v151_v38, %v75_v36 }
  0xb2   :  { %v86_v41 = vrot.slane %v78_v39, %v85_v37  ;;  %v80_v42 = vmul.f32 %v78_v39, %v70_v26 }
  0xb4   :  { %90 = vrot.lane.b32.xlu1 %v86_v41, %s199_s18  ;;  %87 = vrot.lane.b32.xlu0 %v86_v41, %s198_s17  ;;  %v81_v43 = vsub.f32 %v79_v40, %v80_v42 }
  0xb6   :  { %v106_v44 = vrot.slane %v81_v43, %v85_v37 }
  0xb8   :  { %93 = vrot.lane.b32.xlu0 %v86_v41, %s197_s0  ;;  %107 = vrot.lane.b32.xlu1 %v106_v44, %s198_s17 }
  0xbc   :  { %110 = vrot.lane.b32.xlu0 %v106_v44, %s199_s18  ;;  %113 = vrot.lane.b32.xlu1 %v106_v44, %s197_s0 }
 0x126   :  { %v91_v45 = vpop.permute.xlu1 %90  ;;  %v88_v46 = vpop.permute.xlu0 %87 }
 0x127   :  { %v97_v47 = vsel %vm96_vm1, %v78_v39, %v88_v46 }
 0x128   :  { %v99_v48 = vsel %vm98_vm2, %v97_v47, %v91_v45 }
 0x12a   :  { %v94_v49 = vpop.permute.xlu0 %93  ;;  %v108_v50 = vpop.permute.xlu1 %107 }
 0x12b   :  { %v101_v51 = vsel %vm100_vm3, %v99_v48, %v94_v49  ;;  %v116_v53 = vsel %vm96_vm1, %v81_v43, %v108_v50 }
 0x12c   :  { %v122_v52 = vrot.slane %v101_v51, %v85_v37 }
 0x12e   :  { %v111_v54 = vpop.permute.xlu0 %110  ;;  %v114_v55 = vpop.permute.xlu1 %113  ;;  %v123_v58 = vmul.f32 %v122_v52, %v224_v0 }
 0x12f   :  { %v117_v56 = vsel %vm98_vm2, %v116_v53, %v111_v54 }
 0x130   :  { %v118_v57 = vsel %vm100_vm3, %v117_v56, %v114_v55 }
 0x131   :  { %v127_v59 = vrot.slane %v118_v57, %v85_v37 }
 0x133   :  { %v128_v60 = vadd.f32 %v127_v59, %v123_v58 }
 0x135   :  { %129 = vst [vmem:[#allocation5] sm:$0xf] %v128_v60 }
 0x136   :  { %183 = shalt.err (!%p180_p9)
}
 0x137   :  { %139 = dma.vmem_to_hbm [thread:$0]  %s137_s2, 64, %s254_s3, [#allocation4]  }
 0x138   :  { %194 = dma.done.wait [#allocation4], 64  }
 0x139   :  { %195 = vsyncadd [#allocation4], 4294967232 }
 0x13a   :  { %143 = vsyncpa [#allocation3], 1 }
 0x13b   :  { %144 = vsyncpa [#allocation4], 1 }

</bundles_post_ra>
